<compile_context>
chip_gen: v6e
topology: v6e:2x2x1
jax: 0.10.0
libtpu: 0.0.40
codegen_flags: <defaults>
</compile_context>

<pallas_src>
import functools

import jax
import jax.numpy as jnp
from jax.experimental import pallas as pl
from jax.experimental.pallas import tpu as pltpu


def _channel_attention_kernel(x_ref, w1t_ref, b1_ref, w2t_ref, b2_ref, o_ref,
                              *, mxu_avg_pool: bool):
    # x_ref block: (bt, C, L); weights have constant block indices so they stay
    # resident in VMEM across grid steps.
    x = x_ref[...]                                   # (bt, C, L) f32
    w1t = w1t_ref[...]                               # (C, H)
    b1 = b1_ref[...]                                 # (1, H)
    w2t = w2t_ref[...]                               # (H, C)
    b2 = b2_ref[...]                                 # (1, C)

    bt, c, l = x.shape
    inv_l = jnp.float32(1.0 / l)

    # ---- Pooling over L -----------------------------------------------------
    if mxu_avg_pool:
        # Sum over L on the MXU: batched matmul of a (bt,1,L) ones row against x,
        # contracting the last (lane) axis of both operands -> (bt, 1, C), which is
        # already lane-dense along C.  Frees the XLU (only 2 units on v6e/v7x) for
        # the max-pool below; the MXU/vector-extended slot is otherwise idle here.
        ones_row = jnp.ones((bt, 1, l), dtype=jnp.float32)
        s = jnp.einsum("bol,bcl->boc", ones_row, x,
                       preferred_element_type=jnp.float32)   # (bt, 1, C)
        avg = s[:, 0, :] * inv_l                              # (bt, C)
    else:
        # Portability fallback: plain cross-lane reduction (always supported).
        avg = jnp.sum(x, axis=-1) * inv_l                     # (bt, C)
    mx = jnp.max(x, axis=-1)                                  # (bt, C)  (XLU)

    # ---- Squeeze MLP (shared fc1/fc2 Conv1d k=1, applied to both pooled paths) --
    def squeeze_mlp(p):                                       # (bt, C) -> (bt, C)
        h = jnp.dot(p, w1t, preferred_element_type=jnp.float32) + b1     # (bt, H)
        h = jnp.maximum(h, 0.0)
        return jnp.dot(h, w2t, preferred_element_type=jnp.float32) + b2  # (bt, C)

    # sigmoid(fc2(relu(fc1(avg))) + fc2(relu(fc1(max)))) -- biases applied on both
    # paths, exactly like the shared PyTorch Conv1d modules.
    gate = jax.nn.sigmoid(squeeze_mlp(avg) + squeeze_mlp(mx))            # (bt, C)

    # Lane-dense writeback: block last dim is the full L.
    o_ref[...] = (gate[:, :, None] * x).astype(o_ref.dtype)


def _vmem_capacity_bytes() -> int:
    """Per-TensorCore VMEM capacity; conservative (v7x-class 64 MiB) on failure."""
    try:
        return int(pltpu.get_tpu_info().vmem_capacity_bytes)
    except Exception:
        return 64 * 1024 * 1024


def channel_attention(x, w1, b1, w2, b2, *, in_place: bool = False,
                      use_mxu_avg_pool: bool = True):
    """ChannelAttention forward: sigmoid(fc2(relu(fc1(avg||max pool))))*x.

    x: (B, C, L) float32.
    Weight layout relative to PyTorch ChannelAttention:
      fc1 = Conv1d(C, H, 1):  weight (H, C, 1) -> w1 (H, C); bias (H,) -> b1 (1, H)
      fc2 = Conv1d(H, C, 1):  weight (C, H, 1) -> w2 (C, H); bias (C,) -> b2 (1, C)

    in_place=True adds input_output_aliases={0: 0} (write gate*x over x's buffer).
    Only use it when x's buffer is actually donated (jax.jit(..., donate_argnums=...));
    otherwise XLA inserts a defensive full copy of x, which is slower than the default
    out-of-place path.  With in_place=True the caller must not reuse x afterwards.
    """
    B, C, L = x.shape
    H = w1.shape[0]

    # Kernel-side weight layout: pre-transposed so the squeeze MLP is two plain
    # row-major matmuls (tiny one-time transposes, done outside the kernel).
    w1t = jnp.transpose(w1)          # (C, H)
    w2t = jnp.transpose(w2)          # (H, C)

    # --- Generation-gated block / VMEM budgets --------------------------------
    vmem_cap = _vmem_capacity_bytes()
    if vmem_cap >= 128 * 1024 * 1024:
        # v5e / v6e: 128 MiB VMEM, single TensorCore per chip.  Bigger blocks ->
        # fewer grid steps, longer contiguous DMA bursts.
        block_bytes_budget = 16 * 1024 * 1024
        vmem_limit_bytes = 96 * 1024 * 1024
        min_grid_steps = 1
    else:
        # v7x-class: 64 MiB VMEM per TC, 2 TensorCores per chip.  Keep the
        # double-buffered in+out footprint (~4x block) well under 64 MiB and make
        # sure the parallel grid has >= 2 steps so both TCs stream half of x.
        block_bytes_budget = 8 * 1024 * 1024
        vmem_limit_bytes = 48 * 1024 * 1024
        min_grid_steps = 2

    # --- Batch rows per block --------------------------------------------------
    bytes_per_batch = C * L * x.dtype.itemsize
    bt_cap = int(max(1, min(B, block_bytes_budget // max(1, bytes_per_batch))))
    bt_cap = max(1, min(bt_cap, pl.cdiv(B, min_grid_steps)))
    # Largest divisor of B that fits the cap: every grid step is full, so there is
    # no ragged tail DMA'ing/computing rows that get discarded (and max() never
    # reads undefined data).
    bt = 1
    for d in range(1, bt_cap + 1):
        if B % d == 0:
            bt = d
    grid = (B // bt,)
    # NOTE: last two block dims equal the full (C, L) extents, so the (8,128)
    # divisibility rule does not apply; x is read exactly once and written once.
    # TODO(synk): if L is not a multiple of 128, pad L in the wrapper (max-safe pad
    # + masked mean) so the writeback stays lane-dense; current code is still
    # correct for ragged L but uses masked partial stores.

    kernel = functools.partial(_channel_attention_kernel,
                               mxu_avg_pool=use_mxu_avg_pool)

    return pl.pallas_call(
        kernel,
        out_shape=jax.ShapeDtypeStruct((B, C, L), x.dtype),
        grid=grid,
        in_specs=[
            pl.BlockSpec((bt, C, L), lambda i: (i, 0, 0)),
            pl.BlockSpec((C, H), lambda i: (0, 0)),
            pl.BlockSpec((1, H), lambda i: (0, 0)),
            pl.BlockSpec((H, C), lambda i: (0, 0)),
            pl.BlockSpec((1, C), lambda i: (0, 0)),
        ],
        out_specs=pl.BlockSpec((bt, C, L), lambda i: (i, 0, 0)),
        input_output_aliases=({0: 0} if in_place else {}),
        compiler_params=pltpu.CompilerParams(
            dimension_semantics=("parallel",),
            vmem_limit_bytes=vmem_limit_bytes,
        ),
    )(x, w1t, b1, w2t, b2)


def channel_attention_ref(x, w1, b1, w2, b2):
    # Pure-JAX reference mirroring the PyTorch forward.
    avg = jnp.mean(x, axis=-1)                        # (B, C)
    mx = jnp.max(x, axis=-1)                          # (B, C)

    def mlp(p):                                       # p: (B, C)
        h = jnp.maximum(p @ w1.T + b1, 0.0)           # (B, H)
        return h @ w2.T + b2                          # (B, C)

    gate = jax.nn.sigmoid(mlp(avg) + mlp(mx))         # (B, C)
    return gate[:, :, None] * x


if __name__ == "__main__":
    B, C, L = 2, 32, 128
    reduction = 16
    H = C // reduction  # 2

    key = jax.random.PRNGKey(0)
    kx, k1, k2, k3, k4 = jax.random.split(key, 5)

    x = jax.random.normal(kx, (B, C, L), dtype=jnp.float32)
    w1 = jax.random.normal(k1, (H, C), dtype=jnp.float32) * 0.1
    b1 = jax.random.normal(k2, (1, H), dtype=jnp.float32) * 0.1
    w2 = jax.random.normal(k3, (C, H), dtype=jnp.float32) * 0.1
    b2 = jax.random.normal(k4, (1, C), dtype=jnp.float32) * 0.1

    ref = channel_attention_ref(x, w1, b1, w2, b2)
    jax.block_until_ready(ref)

    try:
        out = channel_attention(x, w1, b1, w2, b2)
        jax.block_until_ready(out)
    except Exception:
        # Portability fallback: if this Mosaic build rejects the batched pooled
        # einsum, the XLU-reduction avg-pool path is always supported.
        out = channel_attention(x, w1, b1, w2, b2, use_mxu_avg_pool=False)
        jax.block_until_ready(out)

    assert out.shape == (B, C, L) and out.dtype == jnp.float32
    # Tolerance allows for MXU f32 accumulation-order differences vs. the XLA ref.
    assert jnp.allclose(out, ref, atol=1e-4, rtol=1e-4), "mismatch vs reference"

    print("KERNEL_OK")
</pallas_src>

<mosaic_0001>
module attributes {stable_mosaic.version = 11 : i64} {
  func.func @_channel_attention_kernel(%arg0: i32, %arg1: memref<1x32x128xf32, #tpu.memory_space<vmem>>, %arg2: memref<32x2xf32, #tpu.memory_space<vmem>>, %arg3: memref<1x2xf32, #tpu.memory_space<vmem>>, %arg4: memref<2x32xf32, #tpu.memory_space<vmem>>, %arg5: memref<1x32xf32, #tpu.memory_space<vmem>>, %arg6: memref<1x32x128xf32, #tpu.memory_space<vmem>>) attributes {dimension_semantics = [#tpu.dimension_semantics<parallel>], iteration_bounds = array<i64: 2>, scalar_prefetch = 0 : i64, scratch_operands = 0 : i64, tpu.core_type = #tpu.core_type<tc>, window_params = [{transform_indices = @transform_0, window_bounds = array<i64: 1, 32, 128>}, {pipeline_mode = #tpu.pipeline_mode<synchronous>, transform_indices = @transform_1, window_bounds = array<i64: 32, 2>}, {pipeline_mode = #tpu.pipeline_mode<synchronous>, transform_indices = @transform_2, window_bounds = array<i64: 1, 2>}, {pipeline_mode = #tpu.pipeline_mode<synchronous>, transform_indices = @transform_3, window_bounds = array<i64: 2, 32>}, {pipeline_mode = #tpu.pipeline_mode<synchronous>, transform_indices = @transform_4, window_bounds = array<i64: 1, 32>}, {transform_indices = @transform_5, window_bounds = array<i64: 1, 32, 128>}]} {
    %c0 = arith.constant 0 : index
    %c0_0 = arith.constant 0 : index
    %c0_1 = arith.constant 0 : index
    %0 = vector.load %arg1[%c0, %c0_0, %c0_1] : memref<1x32x128xf32, #tpu.memory_space<vmem>>, vector<1x32x128xf32>
    %c0_2 = arith.constant 0 : index
    %c0_3 = arith.constant 0 : index
    %1 = vector.load %arg2[%c0_2, %c0_3] : memref<32x2xf32, #tpu.memory_space<vmem>>, vector<32x2xf32>
    %c0_4 = arith.constant 0 : index
    %c0_5 = arith.constant 0 : index
    %2 = vector.load %arg3[%c0_4, %c0_5] : memref<1x2xf32, #tpu.memory_space<vmem>>, vector<1x2xf32>
    %c0_6 = arith.constant 0 : index
    %c0_7 = arith.constant 0 : index
    %3 = vector.load %arg4[%c0_6, %c0_7] : memref<2x32xf32, #tpu.memory_space<vmem>>, vector<2x32xf32>
    %c0_8 = arith.constant 0 : index
    %c0_9 = arith.constant 0 : index
    %4 = vector.load %arg5[%c0_8, %c0_9] : memref<1x32xf32, #tpu.memory_space<vmem>>, vector<1x32xf32>
    %cst = arith.constant 1.000000e+00 : f32
    %5 = vector.broadcast %cst : f32 to vector<1x1x128xf32>
    "tpu.trace_start"() <{level = 10 : i32, message = "bol,bcl->boc"}> : () -> ()
    %cst_10 = arith.constant dense<0.000000e+00> : vector<1x1x32xf32>
    %6 = tpu.matmul %5, %0, %cst_10 {dimension_numbers = #tpu.dot_dimension_numbers<[2], [2], [1], [1], [0, 0, 0, 1, 1, 1], [0], [0]>} : vector<1x1x128xf32>, vector<1x32x128xf32>, vector<1x1x32xf32> -> vector<1x1x32xf32>
    "tpu.trace_stop"() : () -> ()
    %7 = vector.shape_cast %6 : vector<1x1x32xf32> to vector<1x32xf32>
    %cst_11 = arith.constant 7.812500e-03 : f32
    %8 = vector.broadcast %cst_11 : f32 to vector<1x32xf32>
    %9 = arith.mulf %7, %8 : vector<1x32xf32>
    %cst_12 = arith.constant dense<0xFF800000> : vector<1x32xf32>
    %10 = vector.multi_reduction <maximumf>, %0, %cst_12 [2] : vector<1x32x128xf32> to vector<1x32xf32>
    %cst_13 = arith.constant dense<0.000000e+00> : vector<1x2xf32>
    %11 = tpu.matmul %9, %1, %cst_13 {dimension_numbers = #tpu.dot_dimension_numbers<[1], [0], [0], [1], [0, 0, 1, 1], [], []>} : vector<1x32xf32>, vector<32x2xf32>, vector<1x2xf32> -> vector<1x2xf32>
    %12 = arith.addf %11, %2 : vector<1x2xf32>
    %cst_14 = arith.constant 0.000000e+00 : f32
    %13 = vector.broadcast %cst_14 : f32 to vector<1x2xf32>
    %14 = arith.maximumf %12, %13 : vector<1x2xf32>
    %cst_15 = arith.constant dense<0.000000e+00> : vector<1x32xf32>
    %15 = tpu.matmul %14, %3, %cst_15 {dimension_numbers = #tpu.dot_dimension_numbers<[1], [0], [0], [1], [0, 0, 1, 1], [], []>} : vector<1x2xf32>, vector<2x32xf32>, vector<1x32xf32> -> vector<1x32xf32>
    %16 = arith.addf %15, %4 : vector<1x32xf32>
    %cst_16 = arith.constant dense<0.000000e+00> : vector<1x2xf32>
    %17 = tpu.matmul %10, %1, %cst_16 {dimension_numbers = #tpu.dot_dimension_numbers<[1], [0], [0], [1], [0, 0, 1, 1], [], []>} : vector<1x32xf32>, vector<32x2xf32>, vector<1x2xf32> -> vector<1x2xf32>
    %18 = arith.addf %17, %2 : vector<1x2xf32>
    %cst_17 = arith.constant 0.000000e+00 : f32
    %19 = vector.broadcast %cst_17 : f32 to vector<1x2xf32>
    %20 = arith.maximumf %18, %19 : vector<1x2xf32>
    %cst_18 = arith.constant dense<0.000000e+00> : vector<1x32xf32>
    %21 = tpu.matmul %20, %3, %cst_18 {dimension_numbers = #tpu.dot_dimension_numbers<[1], [0], [0], [1], [0, 0, 1, 1], [], []>} : vector<1x2xf32>, vector<2x32xf32>, vector<1x32xf32> -> vector<1x32xf32>
    %22 = arith.addf %21, %4 : vector<1x32xf32>
    %23 = arith.addf %16, %22 : vector<1x32xf32>
    %24 = arith.negf %23 : vector<1x32xf32>
    %25 = math.exp %24 : vector<1x32xf32>
    %cst_19 = arith.constant 1.000000e+00 : f32
    %26 = vector.broadcast %cst_19 : f32 to vector<1x32xf32>
    %27 = arith.addf %26, %25 : vector<1x32xf32>
    %28 = arith.divf %26, %27 : vector<1x32xf32>
    %29 = vector.shape_cast %28 : vector<1x32xf32> to vector<1x32x1xf32>
    %30 = vector.broadcast %29 : vector<1x32x1xf32> to vector<1x32x128xf32>
    %31 = arith.mulf %30, %0 : vector<1x32x128xf32>
    %c0_20 = arith.constant 0 : index
    %c0_21 = arith.constant 0 : index
    %c0_22 = arith.constant 0 : index
    %32 = vector.load %arg6[%c0_20, %c0_21, %c0_22] : memref<1x32x128xf32, #tpu.memory_space<vmem>>, vector<1x32x128xf32>
    tpu.vector_store %arg6[%c0_20, %c0_21, %c0_22], %31 {strides = array<i32>} : memref<1x32x128xf32, #tpu.memory_space<vmem>>, vector<1x32x128xf32>,
    return
  }
  func.func @transform_0(%arg0: i32) -> (i32, i32, i32) {
    %c0_i32 = arith.constant 0 : i32
    %c0_i32_0 = arith.constant 0 : i32
    %c0_i32_1 = arith.constant 0 : i32
    return %arg0, %c0_i32, %c0_i32_0 : i32, i32, i32
  }
  func.func @transform_1(%arg0: i32) -> (i32, i32) {
    %c0_i32 = arith.constant 0 : i32
    %c0_i32_0 = arith.constant 0 : i32
    %c0_i32_1 = arith.constant 0 : i32
    return %c0_i32, %c0_i32_0 : i32, i32
  }
  func.func @transform_2(%arg0: i32) -> (i32, i32) {
    %c0_i32 = arith.constant 0 : i32
    %c0_i32_0 = arith.constant 0 : i32
    %c0_i32_1 = arith.constant 0 : i32
    return %c0_i32, %c0_i32_0 : i32, i32
  }
  func.func @transform_3(%arg0: i32) -> (i32, i32) {
    %c0_i32 = arith.constant 0 : i32
    %c0_i32_0 = arith.constant 0 : i32
    %c0_i32_1 = arith.constant 0 : i32
    return %c0_i32, %c0_i32_0 : i32, i32
  }
  func.func @transform_4(%arg0: i32) -> (i32, i32) {
    %c0_i32 = arith.constant 0 : i32
    %c0_i32_0 = arith.constant 0 : i32
    %c0_i32_1 = arith.constant 0 : i32
    return %c0_i32, %c0_i32_0 : i32, i32
  }
  func.func @transform_5(%arg0: i32) -> (i32, i32, i32) {
    %c0_i32 = arith.constant 0 : i32
    %c0_i32_0 = arith.constant 0 : i32
    %c0_i32_1 = arith.constant 0 : i32
    return %arg0, %c0_i32, %c0_i32_0 : i32, i32, i32
  }
}

module attributes {stable_mosaic.version = 11 : i64} {
  func.func @_channel_attention_kernel(%arg0: i32, %arg1: memref<1x32x128xf32, #tpu.memory_space<vmem>>, %arg2: memref<32x2xf32, #tpu.memory_space<vmem>>, %arg3: memref<1x2xf32, #tpu.memory_space<vmem>>, %arg4: memref<2x32xf32, #tpu.memory_space<vmem>>, %arg5: memref<1x32xf32, #tpu.memory_space<vmem>>, %arg6: memref<1x32x128xf32, #tpu.memory_space<vmem>>) attributes {dimension_semantics = [#tpu.dimension_semantics<parallel>], iteration_bounds = array<i64: 2>, scalar_prefetch = 0 : i64, scratch_operands = 0 : i64, tpu.core_type = #tpu.core_type<tc>, window_params = [{transform_indices = @transform_0, window_bounds = array<i64: 1, 32, 128>}, {pipeline_mode = #tpu.pipeline_mode<synchronous>, transform_indices = @transform_1, window_bounds = array<i64: 32, 2>}, {pipeline_mode = #tpu.pipeline_mode<synchronous>, transform_indices = @transform_2, window_bounds = array<i64: 1, 2>}, {pipeline_mode = #tpu.pipeline_mode<synchronous>, transform_indices = @transform_3, window_bounds = array<i64: 2, 32>}, {pipeline_mode = #tpu.pipeline_mode<synchronous>, transform_indices = @transform_4, window_bounds = array<i64: 1, 32>}, {transform_indices = @transform_5, window_bounds = array<i64: 1, 32, 128>}]} {
    %c0 = arith.constant 0 : index
    %c0_0 = arith.constant 0 : index
    %c0_1 = arith.constant 0 : index
    %0 = vector.load %arg1[%c0, %c0_0, %c0_1] : memref<1x32x128xf32, #tpu.memory_space<vmem>>, vector<1x32x128xf32>
    %c0_2 = arith.constant 0 : index
    %c0_3 = arith.constant 0 : index
    %1 = vector.load %arg2[%c0_2, %c0_3] : memref<32x2xf32, #tpu.memory_space<vmem>>, vector<32x2xf32>
    %c0_4 = arith.constant 0 : index
    %c0_5 = arith.constant 0 : index
    %2 = vector.load %arg3[%c0_4, %c0_5] : memref<1x2xf32, #tpu.memory_space<vmem>>, vector<1x2xf32>
    %c0_6 = arith.constant 0 : index
    %c0_7 = arith.constant 0 : index
    %3 = vector.load %arg4[%c0_6, %c0_7] : memref<2x32xf32, #tpu.memory_space<vmem>>, vector<2x32xf32>
    %c0_8 = arith.constant 0 : index
    %c0_9 = arith.constant 0 : index
    %4 = vector.load %arg5[%c0_8, %c0_9] : memref<1x32xf32, #tpu.memory_space<vmem>>, vector<1x32xf32>
    %cst = arith.constant dense<0.000000e+00> : vector<1x32xf32>
    %5 = vector.multi_reduction <add>, %0, %cst [2] : vector<1x32x128xf32> to vector<1x32xf32>
    %cst_10 = arith.constant 7.812500e-03 : f32
    %6 = vector.broadcast %cst_10 : f32 to vector<1x32xf32>
    %7 = arith.mulf %5, %6 : vector<1x32xf32>
    %cst_11 = arith.constant dense<0xFF800000> : vector<1x32xf32>
    %8 = vector.multi_reduction <maximumf>, %0, %cst_11 [2] : vector<1x32x128xf32> to vector<1x32xf32>
    %cst_12 = arith.constant dense<0.000000e+00> : vector<1x2xf32>
    %9 = tpu.matmul %7, %1, %cst_12 {dimension_numbers = #tpu.dot_dimension_numbers<[1], [0], [0], [1], [0, 0, 1, 1], [], []>} : vector<1x32xf32>, vector<32x2xf32>, vector<1x2xf32> -> vector<1x2xf32>
    %10 = arith.addf %9, %2 : vector<1x2xf32>
    %cst_13 = arith.constant 0.000000e+00 : f32
    %11 = vector.broadcast %cst_13 : f32 to vector<1x2xf32>
    %12 = arith.maximumf %10, %11 : vector<1x2xf32>
    %cst_14 = arith.constant dense<0.000000e+00> : vector<1x32xf32>
    %13 = tpu.matmul %12, %3, %cst_14 {dimension_numbers = #tpu.dot_dimension_numbers<[1], [0], [0], [1], [0, 0, 1, 1], [], []>} : vector<1x2xf32>, vector<2x32xf32>, vector<1x32xf32> -> vector<1x32xf32>
    %14 = arith.addf %13, %4 : vector<1x32xf32>
    %cst_15 = arith.constant dense<0.000000e+00> : vector<1x2xf32>
    %15 = tpu.matmul %8, %1, %cst_15 {dimension_numbers = #tpu.dot_dimension_numbers<[1], [0], [0], [1], [0, 0, 1, 1], [], []>} : vector<1x32xf32>, vector<32x2xf32>, vector<1x2xf32> -> vector<1x2xf32>
    %16 = arith.addf %15, %2 : vector<1x2xf32>
    %cst_16 = arith.constant 0.000000e+00 : f32
    %17 = vector.broadcast %cst_16 : f32 to vector<1x2xf32>
    %18 = arith.maximumf %16, %17 : vector<1x2xf32>
    %cst_17 = arith.constant dense<0.000000e+00> : vector<1x32xf32>
    %19 = tpu.matmul %18, %3, %cst_17 {dimension_numbers = #tpu.dot_dimension_numbers<[1], [0], [0], [1], [0, 0, 1, 1], [], []>} : vector<1x2xf32>, vector<2x32xf32>, vector<1x32xf32> -> vector<1x32xf32>
    %20 = arith.addf %19, %4 : vector<1x32xf32>
    %21 = arith.addf %14, %20 : vector<1x32xf32>
    %22 = arith.negf %21 : vector<1x32xf32>
    %23 = math.exp %22 : vector<1x32xf32>
    %cst_18 = arith.constant 1.000000e+00 : f32
    %24 = vector.broadcast %cst_18 : f32 to vector<1x32xf32>
    %25 = arith.addf %24, %23 : vector<1x32xf32>
    %26 = arith.divf %24, %25 : vector<1x32xf32>
    %27 = vector.shape_cast %26 : vector<1x32xf32> to vector<1x32x1xf32>
    %28 = vector.broadcast %27 : vector<1x32x1xf32> to vector<1x32x128xf32>
    %29 = arith.mulf %28, %0 : vector<1x32x128xf32>
    %c0_19 = arith.constant 0 : index
    %c0_20 = arith.constant 0 : index
    %c0_21 = arith.constant 0 : index
    %30 = vector.load %arg6[%c0_19, %c0_20, %c0_21] : memref<1x32x128xf32, #tpu.memory_space<vmem>>, vector<1x32x128xf32>
    tpu.vector_store %arg6[%c0_19, %c0_20, %c0_21], %29 {strides = array<i32>} : memref<1x32x128xf32, #tpu.memory_space<vmem>>, vector<1x32x128xf32>,
    return
  }
  func.func @transform_0(%arg0: i32) -> (i32, i32, i32) {
    %c0_i32 = arith.constant 0 : i32
    %c0_i32_0 = arith.constant 0 : i32
    %c0_i32_1 = arith.constant 0 : i32
    return %arg0, %c0_i32, %c0_i32_0 : i32, i32, i32
  }
  func.func @transform_1(%arg0: i32) -> (i32, i32) {
    %c0_i32 = arith.constant 0 : i32
    %c0_i32_0 = arith.constant 0 : i32
    %c0_i32_1 = arith.constant 0 : i32
    return %c0_i32, %c0_i32_0 : i32, i32
  }
  func.func @transform_2(%arg0: i32) -> (i32, i32) {
    %c0_i32 = arith.constant 0 : i32
    %c0_i32_0 = arith.constant 0 : i32
    %c0_i32_1 = arith.constant 0 : i32
    return %c0_i32, %c0_i32_0 : i32, i32
  }
  func.func @transform_3(%arg0: i32) -> (i32, i32) {
    %c0_i32 = arith.constant 0 : i32
    %c0_i32_0 = arith.constant 0 : i32
    %c0_i32_1 = arith.constant 0 : i32
    return %c0_i32, %c0_i32_0 : i32, i32
  }
  func.func @transform_4(%arg0: i32) -> (i32, i32) {
    %c0_i32 = arith.constant 0 : i32
    %c0_i32_0 = arith.constant 0 : i32
    %c0_i32_1 = arith.constant 0 : i32
    return %c0_i32, %c0_i32_0 : i32, i32
  }
  func.func @transform_5(%arg0: i32) -> (i32, i32, i32) {
    %c0_i32 = arith.constant 0 : i32
    %c0_i32_0 = arith.constant 0 : i32
    %c0_i32_1 = arith.constant 0 : i32
    return %arg0, %c0_i32, %c0_i32_0 : i32, i32, i32
  }
}

</mosaic_0001>

<bundles_post_ra>
// kernel: tpu_custom_call.1
= control target key start
LH: loop header
LB: loop body
LE: loop exit
PB: predicated region body
PF: predicated region fallthrough
CT: control target
= control target key end

     0   :  { %10 = vsyncpa [#allocation3], 0  ;;  %s1294_s0 = inlined_call_operand.hbm [shape: f32[2,32,128], index: 0, kind: input, shape index: {}]   ;;  %s1295_s1 = inlined_call_operand.vmem [shape: f32[32,2], index: 1, kind: input, shape index: {}]   ;;  %s1296_s2 = inlined_call_operand.vmem [shape: f32[1,2], index: 2, kind: input, shape index: {}]   ;;  %s1297_s3 = inlined_call_operand.vmem [shape: f32[2,32], index: 3, kind: input, shape index: {}]   ;;  %s1298_s4 = inlined_call_operand.vmem [shape: f32[1,32], index: 4, kind: input, shape index: {}]   ;;  %s1299_s5 = inlined_call_operand.hbm [shape: f32[2,32,128], index: 5, kind: output, shape index: {}]  }
   0x1   :  { %12 = vsyncpa [#allocation3 + $0x1], 0 }
   0x2   :  { %13 = vsyncpa [#allocation4], 0 }
   0x3   :  { %15 = vsyncpa [#allocation4 + $0x1], 0  ;;  %s1059_s18 = smov 0   ;;  %s1061_s19 = smov 0  }
   0x4   :  { %s1063_s20 = smov 0   ;;  %s1065_s21 = smov 0  }
   0x5 LB: > { %s1080_s22 = sadd.s32 4294967295, %s1018_s21   ;;  %s784_s23 = sadd.s32 4294967294, %s1018_s21   ;;  %s1018_s21 = sphi %s1065_s21, %s1314_s21   ;;  %s1014_s20 = sphi %s1063_s20, %s1313_s20   ;;  %s1010_s19 = sphi %s1061_s19, %s1312_s19   ;;  %s1006_s18 = sphi %s1059_s18, %s1311_s18  }
   0x6   : > { %s1084_s24 = sadd.s32 1, %s1018_s21   ;;  %s28_s25 = sadd.s32 1, %s1014_s20 }
   0x7   : > { %s25_s26 = ssub.s32 %s1018_s21, %s1084_s24  ;;  %p35_p0 = scmp.ne.s32.totalorder %s1014_s20, %s1010_s19 }
   0x8   : > { %p26_p1 = scmp.eq.s32.totalorder %s25_s26, 0  ;;  %p36_p2 = scmp.eq.s32.totalorder %s1018_s21, 0 }
   0x9   : > { %p41_p3 = scmp.ne.s32.totalorder %s1010_s19, %s1006_s18  ;;  %p42_p4 = scmp.eq.s32.totalorder %s1080_s22, 0 }
   0xa   : > { %s1096_s27 = scalar_select %p26_p1, %s1014_s20, %s28_s25  }
   0xb   : > { %p1098_p5 = por %p36_p2, %p35_p0  ;;  %p1102_p6 = por %p42_p4, %p41_p3 }
   0xc   : > { %p149_p7 = scmp.eq.s32.totalorder %s1080_s22, 1  ;;  %p155_p8 = scmp.eq.s32.totalorder %s784_s23, 1 }
   0xd   : > { %s1303_s29 = scalar_select %p1102_p6, 1, 0 }
   0xe   : > { %p881_p10 = scmp.lt.s32.totalorder %s1018_s21, 2  ;;  %p1109_p11 = por %p149_p7, %p35_p0 }
   0xf   : > { %p1113_p12 = por %p155_p8, %p41_p3  ;;  %s187_s7 = sand.u32 1, %s1014_s20  }
  0x10   : > { %s1304_s30 = scalar_select %p1109_p11, 1, 0 }
  0x11   : > { %s1305_s6 = scalar_select %p1113_p12, 1, 0 }
  0x12   : > { %s805_s8 = sshll.u32 %s1018_s21, 9  ;;  %s787_s9 = sshll.u32 %s187_s7, 5 }
  0x13   : > { %s1122_s12 = scalar_lea.hbm %s1294_s0, %s805_s8  ;;  %s191_s13 = scalar_lea.vmem [#allocation2], %s787_s9 }
  0x14   : > { %s198_s14 = sshll.u32 %s191_s13, 4  ;;  %p1126_p13 = pnand %p881_p10, %p1098_p5  ;;  %s1130_s14 = int_to_ptr.vmem [resolvable:$true] %s198_s14 }
  0x15   : > { %s1132_s16 = scalar_lea.sflag [#allocation3], %s187_s7  ;;  %s926_s17 = scalar_lea.hbm %s1122_s12, 512 }
  0x16   : > { %p927_p0 = scmp.ne.s32.totalorder %s1122_s12, %s926_s17  ;;  %p928_p1 = pneg %p1126_p13 }
  0x17   : > { %s931_s26 = scalar_lea.hbm %s1294_s0, 1024  ;;  %p932_p4 = scmp.lt.s32.totalorder %s1122_s12, %s1294_s0 }
  0x18   : > { %p929_p2 = pnand %p928_p1, %p927_p0  ;;  %p933_p5 = scmp.lt.s32.totalorder %s931_s26, %s926_s17 }
  0x1a   : > { %p930_p3 = pneg %p929_p2  ;;  %p934_p7 = por %p933_p5, %p932_p4 }
  0x1c   : > { %p935_p8 = pnand %p934_p7, %p930_p3 }
  0x1e   : > { %938 = shalt.err (!%p935_p8)
}
  0x1f   : > { %s939_s7 = scalar_lea.vmem %s1130_s14, 512  ;;  %s1020_s9 = smov [#allocation2]  }
  0x20   : > { %p940_p10 = scmp.ne.s32.totalorder %s1130_s14, %s939_s7  ;;  %s944_s10 = sshll.u32 %s1020_s9, 4  ;;  %s945_s10 = int_to_ptr.vmem [resolvable:$false] %s944_s10 }
  0x21   : > { %s946_s11 = scalar_lea.vmem %s945_s10, 1024  ;;  %p947_p2 = scmp.lt.s32.totalorder %s1130_s14, %s945_s10 }
  0x22   : > { %p942_p9 = pnand %p940_p10, %p928_p1  ;;  %p948_p12 = scmp.lt.s32.totalorder %s946_s11, %s939_s7 }
  0x24   : > { %p943_p0 = pneg %p942_p9  ;;  %p949_p11 = por %p948_p12, %p947_p2 }
  0x26   : > { %p950_p6 = pnand %p949_p11, %p943_p0 }
  0x28   : > { %953 = shalt.err (!%p950_p6)
}
  0x29   : > { %s1021_s13 = smov 128   ;;  %s1022_s17 = smov 8  }
  0x2a   : > { %876 = dma.hbm_to_vmem [thread:$0]  (!%p1126_p13), %s1122_s12, 512, %s1130_s14, %s1132_s16, %s1021_s13, %s1021_s13, %s1022_s17  }
  0x2b   : > { %p790_p9 = scmp.ge.s32.totalorder %s1018_s21, 1  ;;  %p206_p1 = scmp.lt.s32.totalorder %s1018_s21, 3 }
  0x2d   : > { %p207_p3 = pnand %p790_p9, %p206_p1 }
  0x2e   : > { %s1156_s23 = sand.u32 (!%p207_p3), 1, %s1010_s19   ;;  %p1307_p6 = scmp.ne.s32.totalorder (!%p207_p3), %s1303_s29, 0 }
  0x2f   : > { %210 = sbr.rel (%p207_p3) target bundleno = 1038 (0x40e), region = 40  ;;  %s791_s25 = sshll.u32 (!%p207_p3), %s1156_s23, 5 }
  0x30   : > { %s213_s26 = scalar_lea.sflag (!%p207_p3), [#allocation3], %s1156_s23  ;;  %s216_s28 = scalar_lea.vmem (!%p207_p3), [#allocation2], %s791_s25 }
  0x34   : > { %997 = dma.done.wait (%p1307_p6), %s213_s26, 512  }
  0x35   : > { %999 = vsyncadd (%p1307_p6), %s213_s26, 4294966784  ;;  %v1023_v0 = vmov 0.0   ;;  %vm1024_vm0 = vmmov 0   ;;  %v1172_v1 = vld [vmem:[%s216_s28 + $0x18] sm:$0xff]  ;;  %v1174_v2 = vld [vmem:[%s216_s28 + $0x10] sm:$0xff]  ;;  %v1025_v7 = vmov 1.0   ;;  %v490_v14 = vlaneseq }
  0x36   : > { %826 = vmatprep.subr.mxu0 %v1023_v0  ;;  %834 = vmatprep.mubr.msk.f32.mxu0 %vm1024_vm0, %v1023_v0  ;;  %v1180_v3 = vld [vmem:[%s1295_s1 + $0x18] sm:$0xff]  ;;  %v1185_v4 = vld [vmem:[%s1295_s1 + $0x10] sm:$0xff]  ;;  %v1189_v5 = vld [vmem:[%s216_s28] sm:$0xff]  ;;  %vm333_vm1 = vcmask 261120   ;;  %vm412_vm2 = vcmask 1041408   ;;  %vm408_vm3 = vcmask 15360  }
  0x37   : > { %837 = vmatprep.subr.mxu1 %v1023_v0  ;;  %845 = vmatprep.mubr.msk.f32.mxu1 %vm1024_vm0, %v1023_v0  ;;  %v1198_v6 = vld [vmem:[%s216_s28 + $0x8] sm:$0xff]  ;;  %v247_v9 = vld [vmem:[%s1295_s1] sm:$0xff]  ;;  %v491_v15 = vand.u32 127, %v490_v14  ;;  %v493_v17 = vshrl.u32 %v490_v14, 7  ;;  %vm501_vm4 = vcmask 130112   ;;  %vm508_vm5 = vcmask 195712  }
  0x38   : > { %827 = vmatpush3.xpose.msra.mxu0 %v1172_v1  ;;  %329 = vmax.xlane.f32.xlu1 %v1174_v2  ;;  %v248_v8 = vld [vmem:[%s1295_s1 + $0x8] sm:$0xff]  ;;  %v252_v13 = vld [vmem:[%s1297_s3] sm:$0x3]  ;;  %vm515_vm6 = vcmask 261312   ;;  %s242_s29 = scalar_lea.vmem [#allocation5], %s791_s25  ;;  %s806_s14 = sshll.u32 %s1080_s22, 9 }
  0x39   : > { %828 = vmatprep.subr.mxu0 %v1023_v0  ;;  %838 = vmatpush3.msra.mxu1 %v1180_v3  ;;  %v496_v18 = vadd.s32 4294967288, %v491_v15  ;;  %v503_v19 = vadd.s32 4294967280, %v491_v15  ;;  %v494_v20 = vsub.s32 %v491_v15, %v493_v17  ;;  %v251_v21 = vld [vmem:[%s1296_s2] sm:$0x1]  ;;  %v510_v26 = vadd.s32 4294967272, %v491_v15  ;;  %s711_s12 = sshll.u32 %s242_s29, 4  ;;  %s1250_s8 = scalar_lea.hbm %s1299_s5, %s806_s14  ;;  %s1245_s12 = int_to_ptr.vmem [resolvable:$true] %s711_s12 }
  0x3a   : > { %839 = vmatprep.subr.mxu1 %v1023_v0  ;;  %325 = vmax.xlane.f32.xlu0 %v1189_v5  ;;  %v253_v46 = vld [vmem:[%s1298_s4] sm:$0x1]  ;;  %v672_v55 = vsub.s32 0, %v493_v17  ;;  %s698_s25 = scalar_lea.sflag [#allocation4], %s1156_s23  ;;  %s954_s7 = scalar_lea.vmem %s1245_s12, 512 }
  0x3b   : > { %840 = vmatpush3.msra.mxu1 %v1185_v4  ;;  %v499_v22 = vsub.s32 %v496_v18, %v493_v17  ;;  %v506_v27 = vsub.s32 %v503_v19, %v493_v17  ;;  %v513_v33 = vsub.s32 %v510_v26, %v493_v17  ;;  %p955_p11 = scmp.ne.s32.totalorder %s1245_s12, %s954_s7  ;;  %p1308_p12 = scmp.ne.s32.totalorder %s1304_s30, 0 }
  0x3c   : > { %829 = vmatpush3.xpose.msra.mxu0 %v1174_v2  ;;  %841 = vmatprep.subr.mxu1 %v1023_v0  ;;  %s1026_s22 = smov [#allocation5]  }
  0x3d   : > { %830 = vmatprep.subr.mxu0 %v1023_v0  ;;  %331 = vmax.xlane.f32.xlu1 %v1172_v1  ;;  %p956_p13 = pnand %p955_p11, %p1308_p12  ;;  %s958_s9 = sshll.u32 %s1026_s22, 4  ;;  %s959_s9 = int_to_ptr.vmem [resolvable:$false] %s958_s9 }
  0x3e   : > { %327 = vmax.xlane.f32.xlu0 %v1198_v6  ;;  %842 = vmatpush3.msra.mxu1 %v248_v8  ;;  %s960_s10 = scalar_lea.vmem %s959_s9, 1024  ;;  %p961_p5 = scmp.lt.s32.totalorder %s1245_s12, %s959_s9 }
  0x3f   : > { %843 = vmatprep.subr.mxu1 %v1023_v0  ;;  %p957_p4 = pneg %p956_p13  ;;  %p962_p7 = scmp.lt.s32.totalorder %s960_s10, %s954_s7 }
  0x40   : > { %831 = vmatpush3.xpose.msra.mxu0 %v1198_v6  ;;  %844 = vmatpush3.msra.mxu1 %v247_v9 }
  0x41   : > { %832 = vmatprep.subr.mxu0 %v1023_v0  ;;  %848 = vmatprep.subr.mxu1 %v1023_v0  ;;  %p963_p8 = por %p962_p7, %p961_p5 }
  0x43   : > { %p964_p10 = pnand %p963_p8, %p957_p4 }
  0x44   : > { %833 = vmatpush3.xpose.msra.mxu0 %v1189_v5 }
  0x45   : > { %864 = vmatprep.subr.mxu0 %v1023_v0 }
  0x47   : > { %835 = vmatmul.mubr.f32.vlgmr.msra.gmra.mxu0 %v1025_v7 }
  0x48   : > { %866 = vmatprep.mubr.msk.f32.mxu0 %vm1024_vm0, %v1023_v0  ;;  %865 = vmatpush3.msk.msra.mxu0 %vm412_vm2, %v252_v13 }
  0xc1   : > { %v330_v23 = vpop.xlane.xlu1 %329 }
  0xc2   : > { %v507_v34 = vrot.slane %v330_v23, %v506_v27 }
  0xc3   : > { %v326_v16 = vpop.xlane.xlu0 %325 }
  0xc4   : > { %v495_v29 = vrot.slane %v326_v16, %v494_v20 }
  0xc6   : > { %v332_v35 = vpop.xlane.xlu1 %331 }
  0xc7   : > { %v328_v24 = vpop.xlane.xlu0 %327  ;;  %v514_v37 = vrot.slane %v332_v35, %v513_v33 }
  0xc8   : > { %v500_v30 = vrot.slane %v328_v24, %v499_v22 }
  0xca   : > { %v502_v36 = vsel %vm501_vm4, %v500_v30, %v495_v29 }
  0xcb   : > { %v509_v38 = vsel %vm508_vm5, %v507_v34, %v502_v36 }
  0xcc   : > { %v516_v39 = vsel %vm515_vm6, %v514_v37, %v509_v38 }
 0x107   : > { %v320_v10 = vpop.f32.mrf.mxu0 }
 0x108   : > { %v324_v11 = vmul.f32 0.0078125, %v320_v10 }
 0x109   : > { %v836_v12 = vpop.f32.mrf.mxu0 }
 0x10a   : > { %846 = vmatmul.mubr.msk.f32.vlgmr.msra.gmra.mxu1 %vm333_vm1, %v324_v11 }
 0x10b   : > { %850 = vmatprep.mubr.msk.f32.mxu1 %vm1024_vm0, %v1023_v0  ;;  %849 = vmatpush3.msk.msra.mxu1 %vm412_vm2, %v252_v13 }
 0x10c   : > { %853 = vmatprep.subr.mxu1 %v1023_v0 }
 0x1ca   : > { %v403_v25 = vpop.f32.mrf.mxu1 }
 0x1cb   : > { %v404_v28 = vadd.f32 %v403_v25, %v251_v21 }
 0x1cc   : > { %v847_v31 = vpop.f32.mrf.mxu1 }
 0x1cd   : > { %v407_v32 = vmax.f32 %v404_v28, 0.0 }
 0x1cf   : > { %851 = vmatmul.mubr.msk.f32.vlgmr.msra.gmra.mxu1 %vm408_vm3, %v407_v32 }
 0x1d0   : > { %854 = vmatpush3.msra.mxu1 %v1180_v3  ;;  %861 = vmatprep.mubr.msk.f32.mxu1 %vm1024_vm0, %v1023_v0 }
 0x1d1   : > { %855 = vmatprep.subr.mxu1 %v1023_v0 }
 0x1d2   : > { %856 = vmatpush3.msra.mxu1 %v1185_v4 }
 0x1d3   : > { %857 = vmatprep.subr.mxu1 %v1023_v0 }
 0x1d4   : > { %858 = vmatpush3.msra.mxu1 %v248_v8 }
 0x1d5   : > { %859 = vmatprep.subr.mxu1 %v1023_v0 }
 0x1d6   : > { %860 = vmatpush3.msra.mxu1 %v247_v9 }
 0x1d7   : > { %862 = vmatmul.mubr.msk.f32.vlgmr.msra.gmra.mxu1 %vm333_vm1, %v516_v39 }
 0x28f   : > { %v482_v40 = vpop.f32.mrf.mxu1 }
 0x290   : > { %v483_v48 = vadd.f32 %v482_v40, %v253_v46 }
 0x291   : > { %v852_v41 = vpop.f32.mrf.mxu1 }
 0x297   : > { %v585_v42 = vpop.f32.mrf.mxu1 }
 0x298   : > { %v586_v43 = vadd.f32 %v585_v42, %v251_v21 }
 0x299   : > { %v863_v44 = vpop.f32.mrf.mxu1 }
 0x29a   : > { %v589_v45 = vmax.f32 %v586_v43, 0.0 }
 0x29c   : > { %867 = vmatmul.mubr.msk.f32.vlgmr.msra.gmra.mxu0 %vm408_vm3, %v589_v45 }
 0x35c   : > { %v659_v47 = vpop.f32.mrf.mxu0 }
 0x35d   : > { %v660_v49 = vadd.f32 %v659_v47, %v253_v46 }
 0x35e   : > { %v868_v50 = vpop.f32.mrf.mxu0 }
 0x35f   : > { %v663_v51 = vadd.f32 %v660_v49, %v483_v48 }
 0x361   : > { %v799_v52 = vmul.f32 -1.442695, %v663_v51 }
 0x363   : > { %922 = vpow2.f32 %v799_v52 }
 0x370   : > { %v923_v53 = vpop.eup %922 }
 0x371   : > { %v667_v54 = vadd.f32 1.0, %v923_v53 }
 0x373   : > { %924 = vrcp.f32 %v667_v54 }
 0x380   : > { %v925_v56 = vpop.eup %924 }
 0x381   : > { %v673_v57 = vrot.slane %v925_v56, %v672_v55 }
 0x383   : > { %679 = vbcast.lane.b32.xlu1 %v673_v57, 264  ;;  %675 = vbcast.lane.b32.xlu0 %v673_v57, 256 }
 0x387   : > { %683 = vbcast.lane.b32.xlu1 %v673_v57, 272 }
 0x38b   : > { %687 = vbcast.lane.b32.xlu1 %v673_v57, 280 }
 0x3f5   : > { %v680_v58 = vpop.permute.xlu1 %679  ;;  %v676_v59 = vpop.permute.xlu0 %675 }
 0x3f6   : > { %v690_v60 = vmul.f32 %v680_v58, %v1198_v6  ;;  %v689_v61 = vmul.f32 %v676_v59, %v1189_v5 }
 0x3f8   : > { %694 = vst [vmem:[%s242_s29 + $0x8] sm:$0xff] %v690_v60  ;;  %693 = vst [vmem:[%s242_s29] sm:$0xff] %v689_v61 }
 0x3f9   : > { %v684_v62 = vpop.permute.xlu1 %683 }
 0x3fa   : > { %v691_v63 = vmul.f32 %v684_v62, %v1174_v2 }
 0x3fc   : > { %695 = vst [vmem:[%s242_s29 + $0x10] sm:$0xff] %v691_v63 }
 0x3fd   : > { %v688_v0 = vpop.permute.xlu1 %687 }
 0x3fe   : > { %v692_v3 = vmul.f32 %v688_v0, %v1172_v1 }
 0x400   : > { %696 = vst [vmem:[%s242_s29 + $0x18] sm:$0xff] %v692_v3 }
 0x401   : > { %967 = shalt.err (!%p964_p10)
}
 0x402   : > { %s968_s11 = scalar_lea.hbm %s1250_s8, 512  ;;  %s972_s26 = scalar_lea.hbm %s1299_s5, 1024 }
 0x403   : > { %p969_p0 = scmp.ne.s32.totalorder %s1250_s8, %s968_s11  ;;  %p973_p1 = scmp.lt.s32.totalorder %s1250_s8, %s1299_s5 }
 0x404   : > { %p974_p3 = scmp.lt.s32.totalorder %s972_s26, %s968_s11 }
 0x405   : > { %p970_p2 = pnand %p969_p0, %p1308_p12 }
 0x406   : > { %p975_p6 = por %p974_p3, %p973_p1 }
 0x407   : > { %p971_p9 = pneg %p970_p2 }
 0x409   : > { %p976_p11 = pnand %p975_p6, %p971_p9 }
 0x40b   : > { %979 = shalt.err (!%p976_p11)
}
 0x40c   : > { %s1027_s14 = smov 128   ;;  %s1028_s15 = smov 8  }
 0x40d   : > { %871 = dma.vmem_to_hbm [thread:$0]  (%p1308_p12), %s1245_s12, 512, %s1250_s8, %s698_s25, %s1027_s14, %s1027_s14, %s1028_s15  }
 0x40e PF: > { %s726_s16 = sand.u32 1, %s1006_s18   ;;  %p1309_p13 = scmp.ne.s32.totalorder %s1305_s6, 0 }
 0x40f   : > { %p1310_p4 = scmp.ge.s32.totalorder %s1018_s21, 2  ;;  %s727_s7 = scalar_lea.sflag [#allocation4], %s726_s16 }
 0x411   : > { %p878_p5 = pnand %p1310_p4, %p1309_p13 }
 0x413   : > { %p879_p7 = pneg %p878_p5 }
 0x415   : > { %1001 = dma.done.wait (%p879_p7), %s727_s7, 512  }
 0x416   : > { %1003 = vsyncadd (%p879_p7), %s727_s7, 4294966784  ;;  %p18_p8 = scmp.ge.s32.totalorder %s1084_s24, 4   ;;  %s1311_s18 = smov %s1010_s19 }
 0x417   : > { %s1312_s19 = smov %s1014_s20  ;;  %s1313_s20 = smov %s1096_s27 }
 0x418   : > { %s1314_s21 = smov %s1084_s24  ;;  %20 = sbr.rel (!%p18_p8) target bundleno = 5 (0x5), region = 85 }
 0x41d   :  { %732 = vsyncpa [#allocation3], 1 }
 0x41e   :  { %734 = vsyncpa [#allocation3 + $0x1], 1 }
 0x41f   :  { %735 = vsyncpa [#allocation4], 1 }
 0x420   :  { %737 = vsyncpa [#allocation4 + $0x1], 1 }

// kernel: tpu_custom_call.1
= control target key start
LH: loop header
LB: loop body
LE: loop exit
PB: predicated region body
PF: predicated region fallthrough
CT: control target
= control target key end

     0   :  { %10 = vsyncpa [#allocation3], 0  ;;  %s1254_s0 = inlined_call_operand.hbm [shape: f32[2,32,128], index: 0, kind: input, shape index: {}]   ;;  %s1255_s1 = inlined_call_operand.vmem [shape: f32[32,2], index: 1, kind: input, shape index: {}]   ;;  %s1256_s2 = inlined_call_operand.vmem [shape: f32[1,2], index: 2, kind: input, shape index: {}]   ;;  %s1257_s3 = inlined_call_operand.vmem [shape: f32[2,32], index: 3, kind: input, shape index: {}]   ;;  %s1258_s4 = inlined_call_operand.vmem [shape: f32[1,32], index: 4, kind: input, shape index: {}]   ;;  %s1259_s5 = inlined_call_operand.hbm [shape: f32[2,32,128], index: 5, kind: output, shape index: {}]  }
   0x1   :  { %12 = vsyncpa [#allocation3 + $0x1], 0 }
   0x2   :  { %13 = vsyncpa [#allocation4], 0 }
   0x3   :  { %15 = vsyncpa [#allocation4 + $0x1], 0  ;;  %s1004_s18 = smov 0   ;;  %s1006_s19 = smov 0  }
   0x4   :  { %s1008_s20 = smov 0   ;;  %s1010_s21 = smov 0  }
   0x5 LB: > { %s1025_s22 = sadd.s32 4294967295, %s964_s21   ;;  %s747_s23 = sadd.s32 4294967294, %s964_s21   ;;  %s964_s21 = sphi %s1010_s21, %s1274_s21   ;;  %s960_s20 = sphi %s1008_s20, %s1273_s20   ;;  %s956_s19 = sphi %s1006_s19, %s1272_s19   ;;  %s952_s18 = sphi %s1004_s18, %s1271_s18  }
   0x6   : > { %s1029_s24 = sadd.s32 1, %s964_s21   ;;  %s28_s25 = sadd.s32 1, %s960_s20 }
   0x7   : > { %s25_s26 = ssub.s32 %s964_s21, %s1029_s24  ;;  %p35_p0 = scmp.ne.s32.totalorder %s960_s20, %s956_s19 }
   0x8   : > { %p26_p1 = scmp.eq.s32.totalorder %s25_s26, 0  ;;  %p36_p2 = scmp.eq.s32.totalorder %s964_s21, 0 }
   0x9   : > { %p41_p3 = scmp.ne.s32.totalorder %s956_s19, %s952_s18  ;;  %p42_p4 = scmp.eq.s32.totalorder %s1025_s22, 0 }
   0xa   : > { %s1041_s27 = scalar_select %p26_p1, %s960_s20, %s28_s25  }
   0xb   : > { %p1043_p5 = por %p36_p2, %p35_p0  ;;  %p1047_p6 = por %p42_p4, %p41_p3 }
   0xc   : > { %p149_p7 = scmp.eq.s32.totalorder %s1025_s22, 1  ;;  %p155_p8 = scmp.eq.s32.totalorder %s747_s23, 1 }
   0xd   : > { %s1263_s29 = scalar_select %p1047_p6, 1, 0 }
   0xe   : > { %p828_p10 = scmp.lt.s32.totalorder %s964_s21, 2  ;;  %p1054_p11 = por %p149_p7, %p35_p0 }
   0xf   : > { %p1058_p12 = por %p155_p8, %p41_p3  ;;  %s187_s7 = sand.u32 1, %s960_s20  }
  0x10   : > { %s1264_s30 = scalar_select %p1054_p11, 1, 0 }
  0x11   : > { %s1265_s6 = scalar_select %p1058_p12, 1, 0 }
  0x12   : > { %s768_s8 = sshll.u32 %s964_s21, 9  ;;  %s750_s9 = sshll.u32 %s187_s7, 5 }
  0x13   : > { %s1067_s12 = scalar_lea.hbm %s1254_s0, %s768_s8  ;;  %s191_s13 = scalar_lea.vmem [#allocation2], %s750_s9 }
  0x14   : > { %s198_s14 = sshll.u32 %s191_s13, 4  ;;  %p1071_p13 = pnand %p828_p10, %p1043_p5  ;;  %s1075_s14 = int_to_ptr.vmem [resolvable:$true] %s198_s14 }
  0x15   : > { %s1077_s16 = scalar_lea.sflag [#allocation3], %s187_s7  ;;  %s872_s17 = scalar_lea.hbm %s1067_s12, 512 }
  0x16   : > { %p873_p0 = scmp.ne.s32.totalorder %s1067_s12, %s872_s17  ;;  %p874_p1 = pneg %p1071_p13 }
  0x17   : > { %s877_s26 = scalar_lea.hbm %s1254_s0, 1024  ;;  %p878_p4 = scmp.lt.s32.totalorder %s1067_s12, %s1254_s0 }
  0x18   : > { %p875_p2 = pnand %p874_p1, %p873_p0  ;;  %p879_p5 = scmp.lt.s32.totalorder %s877_s26, %s872_s17 }
  0x1a   : > { %p876_p3 = pneg %p875_p2  ;;  %p880_p7 = por %p879_p5, %p878_p4 }
  0x1c   : > { %p881_p8 = pnand %p880_p7, %p876_p3 }
  0x1e   : > { %884 = shalt.err (!%p881_p8)
}
  0x1f   : > { %s885_s7 = scalar_lea.vmem %s1075_s14, 512  ;;  %s966_s9 = smov [#allocation2]  }
  0x20   : > { %p886_p10 = scmp.ne.s32.totalorder %s1075_s14, %s885_s7  ;;  %s890_s10 = sshll.u32 %s966_s9, 4  ;;  %s891_s10 = int_to_ptr.vmem [resolvable:$false] %s890_s10 }
  0x21   : > { %s892_s11 = scalar_lea.vmem %s891_s10, 1024  ;;  %p893_p2 = scmp.lt.s32.totalorder %s1075_s14, %s891_s10 }
  0x22   : > { %p888_p9 = pnand %p886_p10, %p874_p1  ;;  %p894_p12 = scmp.lt.s32.totalorder %s892_s11, %s885_s7 }
  0x24   : > { %p889_p0 = pneg %p888_p9  ;;  %p895_p11 = por %p894_p12, %p893_p2 }
  0x26   : > { %p896_p6 = pnand %p895_p11, %p889_p0 }
  0x28   : > { %899 = shalt.err (!%p896_p6)
}
  0x29   : > { %s967_s13 = smov 128   ;;  %s968_s17 = smov 8  }
  0x2a   : > { %823 = dma.hbm_to_vmem [thread:$0]  (!%p1071_p13), %s1067_s12, 512, %s1075_s14, %s1077_s16, %s967_s13, %s967_s13, %s968_s17  }
  0x2b   : > { %p753_p9 = scmp.ge.s32.totalorder %s964_s21, 1  ;;  %p206_p1 = scmp.lt.s32.totalorder %s964_s21, 3 }
  0x2d   : > { %p207_p3 = pnand %p753_p9, %p206_p1 }
  0x2e   : > { %s1101_s23 = sand.u32 (!%p207_p3), 1, %s956_s19   ;;  %p1267_p6 = scmp.ne.s32.totalorder (!%p207_p3), %s1263_s29, 0 }
  0x2f   : > { %210 = sbr.rel (%p207_p3) target bundleno = 975 (0x3cf), region = 40  ;;  %s754_s25 = sshll.u32 (!%p207_p3), %s1101_s23, 5 }
  0x30   : > { %s213_s26 = scalar_lea.sflag (!%p207_p3), [#allocation3], %s1101_s23  ;;  %s216_s28 = scalar_lea.vmem (!%p207_p3), [#allocation2], %s754_s25 }
  0x34   : > { %943 = dma.done.wait (%p1267_p6), %s213_s26, 512  }
  0x35   : > { %945 = vsyncadd (%p1267_p6), %s213_s26, 4294966784  ;;  %v1111_v0 = vld [vmem:[%s216_s28] sm:$0xff]  ;;  %v1113_v1 = vld [vmem:[%s216_s28 + $0x10] sm:$0xff]  ;;  %v969_v4 = vmov 0.0   ;;  %vm970_vm0 = vmmov 0   ;;  %v278_v9 = vlaneseq  ;;  %vm289_vm1 = vcmask 130112  }
  0x36   : > { %254 = vadd.xlane.f32.xlu0 %v1111_v0  ;;  %258 = vadd.xlane.f32.xlu1 %v1113_v1  ;;  %v1117_v2 = vld [vmem:[%s216_s28 + $0x8] sm:$0xff]  ;;  %v1119_v3 = vld [vmem:[%s216_s28 + $0x18] sm:$0xff]  ;;  %v1139_v6 = vld [vmem:[%s1255_s1 + $0x10] sm:$0xff]  ;;  %vm296_vm2 = vcmask 195712   ;;  %vm303_vm3 = vcmask 261312   ;;  %vm305_vm4 = vcmask 261120  }
  0x37   : > { %784 = vmatprep.subr.mxu0 %v969_v4  ;;  %v1131_v5 = vld [vmem:[%s1255_s1 + $0x18] sm:$0xff]  ;;  %795 = vmatprep.subr.mxu1 %v969_v4  ;;  %v1146_v7 = vld [vmem:[%s1255_s1 + $0x8] sm:$0xff]  ;;  %v1152_v8 = vld [vmem:[%s1255_s1] sm:$0xff]  ;;  %v279_v10 = vand.u32 127, %v278_v9  ;;  %v1161_v11 = vshrl.u32 %v278_v9, 7  ;;  %vm383_vm5 = vcmask 1041408  }
  0x38   : > { %785 = vmatpush3.msra.mxu0 %v1131_v5  ;;  %792 = vmatprep.mubr.msk.f32.mxu0 %vm970_vm0, %v969_v4  ;;  %v252_v34 = vld [vmem:[%s1257_s3] sm:$0x3]  ;;  %vm379_vm6 = vcmask 15360   ;;  %s242_s29 = scalar_lea.vmem [#allocation5], %s754_s25  ;;  %s769_s14 = sshll.u32 %s1025_s22, 9 }
  0x39   : > { %786 = vmatprep.subr.mxu0 %v969_v4  ;;  %797 = vmatprep.mubr.msk.f32.mxu1 %vm970_vm0, %v969_v4  ;;  %v284_v12 = vadd.s32 4294967288, %v279_v10  ;;  %v298_v13 = vadd.s32 4294967272, %v279_v10  ;;  %v291_v15 = vadd.s32 4294967280, %v279_v10  ;;  %v282_v17 = vsub.s32 %v279_v10, %v1161_v11  ;;  %v251_v36 = vld [vmem:[%s1256_s2] sm:$0x1]  ;;  %s674_s12 = sshll.u32 %s242_s29, 4  ;;  %s1210_s8 = scalar_lea.hbm %s1259_s5, %s769_s14  ;;  %s1205_s12 = int_to_ptr.vmem [resolvable:$true] %s674_s12 }
  0x3a   : > { %256 = vadd.xlane.f32.xlu0 %v1117_v2  ;;  %260 = vadd.xlane.f32.xlu1 %v1119_v3  ;;  %v253_v57 = vld [vmem:[%s1258_s4] sm:$0x1]  ;;  %s661_s25 = scalar_lea.sflag [#allocation4], %s1101_s23  ;;  %s900_s7 = scalar_lea.vmem %s1205_s12, 512 }
  0x3b   : > { %787 = vmatpush3.msra.mxu0 %v1139_v6  ;;  %v287_v19 = vsub.s32 %v284_v12, %v1161_v11  ;;  %v301_v20 = vsub.s32 %v298_v13, %v1161_v11  ;;  %v294_v21 = vsub.s32 %v291_v15, %v1161_v11  ;;  %796 = vmatpush3.msk.msra.mxu1 %vm383_vm5, %v252_v34  ;;  %p901_p11 = scmp.ne.s32.totalorder %s1205_s12, %s900_s7  ;;  %p1268_p12 = scmp.ne.s32.totalorder %s1264_s30, 0 }
  0x3c   : > { %788 = vmatprep.subr.mxu0 %v969_v4  ;;  %800 = vmatprep.subr.mxu1 %v969_v4  ;;  %s971_s22 = smov [#allocation5]  }
  0x3d   : > { %789 = vmatpush3.msra.mxu0 %v1146_v7  ;;  %p902_p13 = pnand %p901_p11, %p1268_p12  ;;  %s904_s9 = sshll.u32 %s971_s22, 4  ;;  %s905_s9 = int_to_ptr.vmem [resolvable:$false] %s904_s9 }
  0x3e   : > { %266 = vmax.xlane.f32.xlu0 %v1111_v0  ;;  %268 = vmax.xlane.f32.xlu1 %v1117_v2  ;;  %s906_s10 = scalar_lea.vmem %s905_s9, 1024  ;;  %p907_p5 = scmp.lt.s32.totalorder %s1205_s12, %s905_s9 }
  0x3f   : > { %790 = vmatprep.subr.mxu0 %v969_v4  ;;  %p903_p4 = pneg %p902_p13  ;;  %p908_p7 = scmp.lt.s32.totalorder %s906_s10, %s900_s7 }
  0x40   : > { %791 = vmatpush3.msra.mxu0 %v1152_v8 }
  0x41   : > { %811 = vmatprep.subr.mxu0 %v969_v4  ;;  %p909_p8 = por %p908_p7, %p907_p5 }
  0x42   : > { %270 = vmax.xlane.f32.xlu0 %v1113_v1  ;;  %272 = vmax.xlane.f32.xlu1 %v1119_v3 }
  0x43   : > { %p910_p10 = pnand %p909_p8, %p903_p4 }
  0xbf   : > { %v255_v14 = vpop.xlane.xlu0 %254  ;;  %v259_v16 = vpop.xlane.xlu1 %258 }
  0xc0   : > { %v262_v18 = vmul.f32 0.0078125, %v255_v14  ;;  %v264_v22 = vmul.f32 0.0078125, %v259_v16 }
  0xc2   : > { %v283_v27 = vrot.slane %v262_v18, %v282_v17  ;;  %v295_v30 = vrot.slane %v264_v22, %v294_v21 }
  0xc3   : > { %v257_v23 = vpop.xlane.xlu0 %256  ;;  %v261_v24 = vpop.xlane.xlu1 %260 }
  0xc4   : > { %v263_v25 = vmul.f32 0.0078125, %v257_v23  ;;  %v265_v26 = vmul.f32 0.0078125, %v261_v24 }
  0xc6   : > { %v288_v28 = vrot.slane %v263_v25, %v287_v19  ;;  %v302_v29 = vrot.slane %v265_v26, %v301_v20 }
  0xc7   : > { %v267_v35 = vpop.xlane.xlu0 %266  ;;  %v269_v37 = vpop.xlane.xlu1 %268 }
  0xc8   : > { %v290_v31 = vsel %vm289_vm1, %v288_v28, %v283_v27  ;;  %v464_v40 = vrot.slane %v267_v35, %v282_v17  ;;  %v468_v41 = vrot.slane %v269_v37, %v287_v19 }
  0xc9   : > { %v297_v32 = vsel %vm296_vm2, %v295_v30, %v290_v31 }
  0xca   : > { %v304_v33 = vsel %vm303_vm3, %v302_v29, %v297_v32  ;;  %v469_v47 = vsel %vm289_vm1, %v468_v41, %v464_v40 }
  0xcb   : > { %793 = vmatmul.mubr.msk.f32.vlgmr.msra.gmra.mxu0 %vm305_vm4, %v304_v33  ;;  %v271_v43 = vpop.xlane.xlu0 %270  ;;  %v273_v46 = vpop.xlane.xlu1 %272 }
  0xcc   : > { %813 = vmatprep.mubr.msk.f32.mxu0 %vm970_vm0, %v969_v4  ;;  %812 = vmatpush3.msk.msra.mxu0 %vm383_vm5, %v252_v34  ;;  %v473_v45 = vrot.slane %v271_v43, %v294_v21  ;;  %v478_v48 = vrot.slane %v273_v46, %v301_v20 }
  0xce   : > { %v474_v49 = vsel %vm296_vm2, %v473_v45, %v469_v47 }
  0xcf   : > { %v479_v50 = vsel %vm303_vm3, %v478_v48, %v474_v49 }
 0x18b   : > { %v374_v38 = vpop.f32.mrf.mxu0 }
 0x18c   : > { %v375_v39 = vadd.f32 %v374_v38, %v251_v36 }
 0x18d   : > { %v794_v42 = vpop.f32.mrf.mxu0 }
 0x18e   : > { %v378_v44 = vmax.f32 %v375_v39, 0.0 }
 0x190   : > { %798 = vmatmul.mubr.msk.f32.vlgmr.msra.gmra.mxu1 %vm379_vm6, %v378_v44 }
 0x191   : > { %801 = vmatpush3.msra.mxu1 %v1131_v5  ;;  %808 = vmatprep.mubr.msk.f32.mxu1 %vm970_vm0, %v969_v4 }
 0x192   : > { %802 = vmatprep.subr.mxu1 %v969_v4 }
 0x193   : > { %803 = vmatpush3.msra.mxu1 %v1139_v6  ;;  %v635_v6 = vsub.s32 0, %v1161_v11 }
 0x194   : > { %804 = vmatprep.subr.mxu1 %v969_v4 }
 0x195   : > { %805 = vmatpush3.msra.mxu1 %v1146_v7 }
 0x196   : > { %806 = vmatprep.subr.mxu1 %v969_v4 }
 0x197   : > { %807 = vmatpush3.msra.mxu1 %v1152_v8 }
 0x198   : > { %809 = vmatmul.mubr.msk.f32.vlgmr.msra.gmra.mxu1 %vm305_vm4, %v479_v50 }
 0x250   : > { %v453_v51 = vpop.f32.mrf.mxu1 }
 0x251   : > { %v454_v59 = vadd.f32 %v453_v51, %v253_v57 }
 0x252   : > { %v799_v52 = vpop.f32.mrf.mxu1 }
 0x258   : > { %v548_v53 = vpop.f32.mrf.mxu1 }
 0x259   : > { %v549_v54 = vadd.f32 %v548_v53, %v251_v36 }
 0x25a   : > { %v810_v55 = vpop.f32.mrf.mxu1 }
 0x25b   : > { %v552_v56 = vmax.f32 %v549_v54, 0.0 }
 0x25d   : > { %814 = vmatmul.mubr.msk.f32.vlgmr.msra.gmra.mxu0 %vm379_vm6, %v552_v56 }
 0x31d   : > { %v622_v58 = vpop.f32.mrf.mxu0 }
 0x31e   : > { %v623_v60 = vadd.f32 %v622_v58, %v253_v57 }
 0x31f   : > { %v815_v61 = vpop.f32.mrf.mxu0 }
 0x320   : > { %v626_v62 = vadd.f32 %v623_v60, %v454_v59 }
 0x322   : > { %v762_v63 = vmul.f32 -1.442695, %v626_v62 }
 0x324   : > { %868 = vpow2.f32 %v762_v63 }
 0x331   : > { %v869_v4 = vpop.eup %868 }
 0x332   : > { %v630_v5 = vadd.f32 1.0, %v869_v4 }
 0x334   : > { %870 = vrcp.f32 %v630_v5 }
 0x341   : > { %v871_v7 = vpop.eup %870 }
 0x342   : > { %v636_v8 = vrot.slane %v871_v7, %v635_v6 }
 0x344   : > { %642 = vbcast.lane.b32.xlu1 %v636_v8, 264  ;;  %638 = vbcast.lane.b32.xlu0 %v636_v8, 256 }
 0x348   : > { %646 = vbcast.lane.b32.xlu1 %v636_v8, 272 }
 0x34c   : > { %650 = vbcast.lane.b32.xlu1 %v636_v8, 280 }
 0x3b6   : > { %v643_v9 = vpop.permute.xlu1 %642  ;;  %v639_v10 = vpop.permute.xlu0 %638 }
 0x3b7   : > { %v653_v12 = vmul.f32 %v643_v9, %v1117_v2  ;;  %v652_v13 = vmul.f32 %v639_v10, %v1111_v0 }
 0x3b9   : > { %657 = vst [vmem:[%s242_s29 + $0x8] sm:$0xff] %v653_v12  ;;  %656 = vst [vmem:[%s242_s29] sm:$0xff] %v652_v13 }
 0x3ba   : > { %v647_v11 = vpop.permute.xlu1 %646 }
 0x3bb   : > { %v654_v14 = vmul.f32 %v647_v11, %v1113_v1 }
 0x3bd   : > { %658 = vst [vmem:[%s242_s29 + $0x10] sm:$0xff] %v654_v14 }
 0x3be   : > { %v651_v15 = vpop.permute.xlu1 %650 }
 0x3bf   : > { %v655_v0 = vmul.f32 %v651_v15, %v1119_v3 }
 0x3c1   : > { %659 = vst [vmem:[%s242_s29 + $0x18] sm:$0xff] %v655_v0 }
 0x3c2   : > { %913 = shalt.err (!%p910_p10)
}
 0x3c3   : > { %s914_s11 = scalar_lea.hbm %s1210_s8, 512  ;;  %s918_s26 = scalar_lea.hbm %s1259_s5, 1024 }
 0x3c4   : > { %p915_p0 = scmp.ne.s32.totalorder %s1210_s8, %s914_s11  ;;  %p919_p1 = scmp.lt.s32.totalorder %s1210_s8, %s1259_s5 }
 0x3c5   : > { %p920_p3 = scmp.lt.s32.totalorder %s918_s26, %s914_s11 }
 0x3c6   : > { %p916_p2 = pnand %p915_p0, %p1268_p12 }
 0x3c7   : > { %p921_p6 = por %p920_p3, %p919_p1 }
 0x3c8   : > { %p917_p9 = pneg %p916_p2 }
 0x3ca   : > { %p922_p11 = pnand %p921_p6, %p917_p9 }
 0x3cc   : > { %925 = shalt.err (!%p922_p11)
}
 0x3cd   : > { %s972_s14 = smov 128   ;;  %s973_s15 = smov 8  }
 0x3ce   : > { %818 = dma.vmem_to_hbm [thread:$0]  (%p1268_p12), %s1205_s12, 512, %s1210_s8, %s661_s25, %s972_s14, %s972_s14, %s973_s15  }
 0x3cf PF: > { %s689_s16 = sand.u32 1, %s952_s18   ;;  %p1269_p13 = scmp.ne.s32.totalorder %s1265_s6, 0 }
 0x3d0   : > { %p1270_p4 = scmp.ge.s32.totalorder %s964_s21, 2  ;;  %s690_s7 = scalar_lea.sflag [#allocation4], %s689_s16 }
 0x3d2   : > { %p825_p5 = pnand %p1270_p4, %p1269_p13 }
 0x3d4   : > { %p826_p7 = pneg %p825_p5 }
 0x3d6   : > { %947 = dma.done.wait (%p826_p7), %s690_s7, 512  }
 0x3d7   : > { %949 = vsyncadd (%p826_p7), %s690_s7, 4294966784  ;;  %p18_p8 = scmp.ge.s32.totalorder %s1029_s24, 4   ;;  %s1271_s18 = smov %s956_s19 }
 0x3d8   : > { %s1272_s19 = smov %s960_s20  ;;  %s1273_s20 = smov %s1041_s27 }
 0x3d9   : > { %s1274_s21 = smov %s1029_s24  ;;  %20 = sbr.rel (!%p18_p8) target bundleno = 5 (0x5), region = 85 }
 0x3de   :  { %695 = vsyncpa [#allocation3], 1 }
 0x3df   :  { %697 = vsyncpa [#allocation3 + $0x1], 1 }
 0x3e0   :  { %698 = vsyncpa [#allocation4], 1 }
 0x3e1   :  { %700 = vsyncpa [#allocation4 + $0x1], 1 }

</bundles_post_ra>
